<compile_context>
chip_gen: v5e
topology: v5e:2x2
jax: 0.10.0
libtpu: 0.0.40
codegen_flags: <defaults>
</compile_context>

<pallas_src>
import jax
import jax.numpy as jnp
from jax.experimental import pallas as pl
from jax.experimental.pallas import tpu as pltpu


def _round_up(x, m):
    return ((x + m - 1) // m) * m


def _fold_factor(dim_head, n_pos, max_fold=8):
    """Number of adjacent query rows folded into one GEMM row.

    Chosen so the folded output width f*n_pos is a multiple of 128 (unmasked
    vector stores -- the biggest measured Pallas lever) and, when possible,
    the folded contraction f*dim_head reaches the MXU-native 128.
    """
    lane_ok = [f for f in range(1, max_fold + 1) if (f * n_pos) % 128 == 0]
    for f in lane_ok:
        if f * dim_head >= 128:
            return f
    if lane_ok:
        return lane_ok[0]
    f = 1
    while f * n_pos < 128 and f < max_fold:
        f += 1
    return f


def _abs_pos_emb_kernel(q_ref, emb_ref, o_ref):
    # q_ref:   (TM, f*D)   block of folded queries
    # emb_ref: (f*D, f*J)  block-diagonal positional-embedding table (resident)
    # o_ref:   (TM, f*J)   lane-dense logits block
    o_ref[...] = jnp.dot(
        q_ref[...], emb_ref[...], preferred_element_type=jnp.float32
    ).astype(o_ref.dtype)


def abs_pos_emb(q, height, width, *, block_m=2048, max_fold=8):
    """Pallas equivalent of AbsPosEmb.forward.

    q:      (B, heads, I, D)
    height: (H, D) parameter
    width:  (W, D) parameter
    returns (B, heads, I, H*W), same dtype as q
    """
    B, Hn, I, D = q.shape
    Hf, Dh = height.shape
    Wf, Dw = width.shape
    assert Dh == D and Dw == D
    J = Hf * Wf
    M = B * Hn * I

    f = _fold_factor(D, J, max_fold)
    Kf, Nf = f * D, f * J

    # Tiny parameter-side precompute: (J, D) table, transposed to (D, J), then
    # replicated block-diagonally to (f*D, f*J).  Off-diagonal blocks are
    # exactly zero, so the extra MXU lanes contribute nothing.
    emb_t = (height[:, None, :] + width[None, :, :]).reshape(J, D).T
    rhs = jnp.kron(jnp.eye(f, dtype=emb_t.dtype), emb_t).astype(q.dtype)

    # Fold f adjacent query rows into one GEMM row (contiguous reshape = free).
    q_flat = q.reshape(M, D)
    M_pad = _round_up(M, f)
    if M_pad != M:
        q_flat = jnp.pad(q_flat, ((0, M_pad - M), (0, 0)))
    M_f = M_pad // f
    q_fold = q_flat.reshape(M_f, Kf)

    isz = q.dtype.itemsize

    # Tile the folded row axis.  Keep >= 2 grid steps when there is enough
    # work so both TensorCores on megacore parts split the grid; otherwise use
    # the biggest tile the VMEM budget allows (budget is v7x-safe).
    if block_m >= M_f and M_f >= 16:
        tm = _round_up(pl.cdiv(M_f, 2), 8)
    else:
        tm = min(block_m, M_f)
    if tm < M_f:
        tm = max(8, (tm // 8) * 8)       # sublane (8) divisibility for the block
    else:
        tm = M_f                          # full-extent block is always legal

    vmem_budget = 32 * 1024 * 1024        # conservative across v5e/v6e/v7x
    resident = 2 * Kf * Nf * isz          # embedding table buffers
    max_tm = max(8, ((vmem_budget - resident) // (2 * (Kf + Nf) * isz) // 8) * 8)
    tm = min(tm, max_tm)

    grid = (pl.cdiv(M_f, tm),)

    vmem_need = (2 * tm * (Kf + Nf) + 2 * Kf * Nf) * isz
    vmem_limit = int(min(max(2 * vmem_need, 32 * 1024 * 1024), 48 * 1024 * 1024))

    # TODO(synk): pipeline_mode=pl.Buffered(1) on the emb BlockSpec would drop
    # its never-used second buffer (Kf*Nf bytes); skipped here as the gain is
    # negligible at these sizes and the kwarg support varies by JAX version.

    out_fold = pl.pallas_call(
        _abs_pos_emb_kernel,
        out_shape=jax.ShapeDtypeStruct((M_f, Nf), q.dtype),
        grid=grid,
        in_specs=[
            pl.BlockSpec((tm, Kf), lambda i: (i, 0)),   # folded q (varies over grid)
            pl.BlockSpec((Kf, Nf), lambda i: (0, 0)),   # emb table (shared, resident)
        ],
        out_specs=pl.BlockSpec((tm, Nf), lambda i: (i, 0)),
        compiler_params=pltpu.CompilerParams(
            dimension_semantics=("parallel",),
            vmem_limit_bytes=vmem_limit,
        ),
        cost_estimate=pl.CostEstimate(
            flops=2 * M_f * Kf * Nf,
            transcendentals=0,
            bytes_accessed=(M_f * Kf + Kf * Nf + M_f * Nf) * isz,
        ),
    )(q_fold, rhs)

    out = out_fold.reshape(M_pad, J)[:M]
    return out.reshape(B, Hn, I, J)


def abs_pos_emb_ref(q, height, width):
    """Pure-JAX reference matching the PyTorch module's forward."""
    emb = (height[:, None, :] + width[None, :, :]).reshape(-1, height.shape[-1])
    return jnp.einsum('bhid,jd->bhij', q, emb)


if __name__ == "__main__":
    key = jax.random.PRNGKey(0)
    k_h, k_w, k_q = jax.random.split(key, 3)

    # Module config: fmap_size=8 (H=W=8 -> 64 positions), dim_head=32.
    H = W = 8
    D = 32
    B, HEADS = 2, 4
    I = H * W  # queries are the flattened feature map, as in BotNet attention

    scale = D ** -0.5
    height = jax.random.normal(k_h, (H, D), dtype=jnp.float32) * scale
    width = jax.random.normal(k_w, (W, D), dtype=jnp.float32) * scale
    q = jax.random.normal(k_q, (B, HEADS, I, D), dtype=jnp.float32)

    out = abs_pos_emb(q, height, width)
    out = jax.block_until_ready(out)

    ref = abs_pos_emb_ref(q, height, width)
    assert out.shape == ref.shape and out.dtype == ref.dtype
    assert jnp.allclose(out, ref, atol=1e-5, rtol=1e-5), "mismatch vs reference"

    print("KERNEL_OK")
</pallas_src>

<mosaic_0001>
module attributes {stable_mosaic.version = 11 : i64} {
  func.func @_abs_pos_emb_kernel(%arg0: i32, %arg1: memref<64x128xf32, #tpu.memory_space<vmem>>, %arg2: memref<128x256xf32, #tpu.memory_space<vmem>>, %arg3: memref<64x256xf32, #tpu.memory_space<vmem>>) attributes {dimension_semantics = [#tpu.dimension_semantics<parallel>], iteration_bounds = array<i64: 2>, scalar_prefetch = 0 : i64, scratch_operands = 0 : i64, tpu.core_type = #tpu.core_type<tc>, window_params = [{transform_indices = @transform_0, window_bounds = array<i64: 64, 128>}, {pipeline_mode = #tpu.pipeline_mode<synchronous>, transform_indices = @transform_1, window_bounds = array<i64: 128, 256>}, {transform_indices = @transform_2, window_bounds = array<i64: 64, 256>}]} {
    %c0 = arith.constant 0 : index
    %c0_0 = arith.constant 0 : index
    %0 = vector.load %arg1[%c0, %c0_0] : memref<64x128xf32, #tpu.memory_space<vmem>>, vector<64x128xf32>
    %c0_1 = arith.constant 0 : index
    %c0_2 = arith.constant 0 : index
    %1 = vector.load %arg2[%c0_1, %c0_2] : memref<128x256xf32, #tpu.memory_space<vmem>>, vector<128x256xf32>
    %cst = arith.constant dense<0.000000e+00> : vector<64x256xf32>
    %2 = tpu.matmul %0, %1, %cst {dimension_numbers = #tpu.dot_dimension_numbers<[1], [0], [0], [1], [0, 0, 1, 1], [], []>} : vector<64x128xf32>, vector<128x256xf32>, vector<64x256xf32> -> vector<64x256xf32>
    %c0_3 = arith.constant 0 : index
    %c0_4 = arith.constant 0 : index
    %3 = vector.load %arg3[%c0_3, %c0_4] : memref<64x256xf32, #tpu.memory_space<vmem>>, vector<64x256xf32>
    tpu.vector_store %arg3[%c0_3, %c0_4], %2 {strides = array<i32>} : memref<64x256xf32, #tpu.memory_space<vmem>>, vector<64x256xf32>,
    return
  }
  func.func @transform_0(%arg0: i32) -> (i32, i32) {
    %c0_i32 = arith.constant 0 : i32
    %c0_i32_0 = arith.constant 0 : i32
    return %arg0, %c0_i32 : i32, i32
  }
  func.func @transform_1(%arg0: i32) -> (i32, i32) {
    %c0_i32 = arith.constant 0 : i32
    %c0_i32_0 = arith.constant 0 : i32
    %c0_i32_1 = arith.constant 0 : i32
    return %c0_i32, %c0_i32_0 : i32, i32
  }
  func.func @transform_2(%arg0: i32) -> (i32, i32) {
    %c0_i32 = arith.constant 0 : i32
    %c0_i32_0 = arith.constant 0 : i32
    return %arg0, %c0_i32 : i32, i32
  }
}

</mosaic_0001>

<bundles_post_ra>
// kernel: tpu_custom_call.1
= control target key start
LH: loop header
LB: loop body
LE: loop exit
PB: predicated region body
PF: predicated region fallthrough
CT: control target
= control target key end

     0   :  { %7 = vsyncpa [#allocation3], 0  ;;  %s860_s0 = inlined_call_operand.hbm [shape: f32[128,128], index: 0, kind: input, shape index: {}]   ;;  %s861_s1 = inlined_call_operand.hbm [shape: f32[128,256], index: 1, kind: input, shape index: {}]   ;;  %s862_s2 = inlined_call_operand.hbm [shape: f32[128,256], index: 2, kind: output, shape index: {}]  }
   0x1   :  { %9 = vsyncpa [#allocation3 + $0x1], 0 }
   0x2   :  { %10 = vsyncpa [#allocation6], 0 }
   0x3   :  { %11 = vsyncpa [#allocation4], 0 }
   0x4   :  { %13 = vsyncpa [#allocation4 + $0x1], 0  ;;  %s690_s9 = smov 0   ;;  %s692_s10 = smov 0  }
   0x5   :  { %s694_s11 = smov 0   ;;  %s696_s12 = smov 0  }
   0x6 LB: > { %s711_s13 = sadd.s32 4294967295, %s666_s12   ;;  %s421_s14 = sadd.s32 4294967294, %s666_s12   ;;  %s666_s12 = sphi %s696_s12, %s872_s12   ;;  %s662_s11 = sphi %s694_s11, %s871_s11   ;;  %s658_s10 = sphi %s692_s10, %s870_s10   ;;  %s654_s9 = sphi %s690_s9, %s869_s9  }
   0x7   : > { %p39_p0 = scmp.ne.s32.totalorder %s658_s10, %s654_s9  ;;  %p40_p1 = scmp.eq.s32.totalorder %s711_s13, 0 }
   0x8   : > { %p84_p2 = scmp.eq.s32.totalorder %s711_s13, 1  ;;  %p90_p3 = scmp.eq.s32.totalorder %s421_s14, 1 }
   0x9   : > { %p720_p4 = por %p40_p1, %p39_p0  ;;  %p422_p5 = scmp.ge.s32.totalorder %s666_s12, 1 }
   0xa   : > { %p725_p6 = por %p90_p3, %p39_p0  ;;  %p97_p7 = scmp.lt.s32.totalorder %s666_s12, 3 }
   0xb   : > { %s108_s19 = sshll.u32 %s861_s1, 4  ;;  %s668_s21 = smov [#allocation5]   ;;  %s109_s19 = int_to_ptr.hbm [resolvable:$true] %s108_s19 }
   0xc   : > { %p733_p8 = pnand %p422_p5, %p97_p7  ;;  %s110_s22 = sshll.u32 %s668_s21, 4  ;;  %s111_s22 = int_to_ptr.vmem [resolvable:$true] %s110_s22 }
   0xd   : > { %s743_s23 = sadd.s32 1, %s666_s12   ;;  %s669_s24 = smov 256  }
   0xe   : > { %p481_p9 = pneg %p733_p8  ;;  %s670_s25 = smov 16  }
   0xf   : > { %s23_s26 = ssub.s32 %s666_s12, %s743_s23  ;;  %s26_s27 = sadd.s32 1, %s662_s11 }
  0x10   : > { %p482_p10 = pnand %p481_p9, %p40_p1  ;;  %p24_p12 = scmp.eq.s32.totalorder %s23_s26, 0 }
  0x11   : > { %p33_p13 = scmp.ne.s32.totalorder %s662_s11, %s658_s10  ;;  %p34_p0 = scmp.eq.s32.totalorder %s666_s12, 0 }
  0x12   : > { %484 = dma.hbm_to_vmem [thread:$0]  (!%p482_p10), %s109_s19, 4096, %s111_s22, [#allocation6], %s669_s24, %s669_s24, %s670_s25  }
  0x13   : > { %p494_p3 = scmp.lt.s32.totalorder %s666_s12, 2  ;;  %p35_p5 = por %p34_p0, %p33_p13 }
  0x14   : > { %s753_s28 = scalar_select %p24_p12, %s662_s11, %s26_s27  }
  0x15   : > { %p757_p7 = por %p84_p2, %p33_p13  ;;  %s124_s30 = sand.u32 1, %s662_s11  }
  0x16   : > { %s438_s3 = sshll.u32 %s666_s12, 6  ;;  %s425_s4 = sshll.u32 %s124_s30, 6 }
  0x17   : > { %s133_s7 = scalar_lea.hbm %s860_s0, %s438_s3  ;;  %s128_s14 = scalar_lea.vmem [#allocation2], %s425_s4 }
  0x18   : > { %s134_s8 = sshll.u32 %s133_s7, 4  ;;  %s136_s17 = sshll.u32 %s128_s14, 4  ;;  %s135_s8 = int_to_ptr.hbm [resolvable:$true] %s134_s8  ;;  %s137_s17 = int_to_ptr.vmem [resolvable:$true] %s136_s17 }
  0x19   : > { %p768_p9 = pnand %p494_p3, %p35_p5  ;;  %s125_s19 = scalar_lea.sflag [#allocation3], %s124_s30 }
  0x1a   : > { %s566_s21 = sshra.s32 %s135_s8, 4  ;;  %s573_s26 = scalar_lea.hbm %s860_s0, 128  ;;  %s567_s21 = int_to_ptr.hbm [resolvable:$true] %s566_s21 }
  0x1b   : > { %s568_s22 = scalar_lea.hbm %s567_s21, 64  ;;  %p570_p10 = pneg %p768_p9 }
  0x1c   : > { %p569_p2 = scmp.ne.s32.totalorder %s567_s21, %s568_s22  ;;  %p574_p0 = scmp.lt.s32.totalorder %s567_s21, %s860_s0 }
  0x1d   : > { %p575_p3 = scmp.lt.s32.totalorder %s573_s26, %s568_s22 }
  0x1e   : > { %p571_p12 = pnand %p570_p10, %p569_p2 }
  0x1f   : > { %p576_p5 = por %p575_p3, %p574_p0 }
  0x20   : > { %p572_p13 = pneg %p571_p12 }
  0x22   : > { %p577_p11 = pnand %p576_p5, %p572_p13 }
  0x24   : > { %580 = shalt.err (!%p577_p11)
}
  0x25   : > { %s671_s30 = smov 128   ;;  %s672_s4 = smov 8  }
  0x26   : > { %488 = dma.hbm_to_vmem [thread:$0]  (!%p768_p9), %s135_s8, 1024, %s137_s17, %s125_s19, %s671_s30, %s671_s30, %s672_s4  }
  0x27   : > { %148 = sbr.rel (%p733_p8) target bundleno = 240 (0xf0), region = 28  ;;  %s785_s5 = sand.u32 (!%p733_p8), 1, %s658_s10  }
  0x28   : > { %s429_s6 = sshll.u32 (!%p733_p8), %s785_s5, 6  ;;  %s151_s7 = scalar_lea.sflag (!%p733_p8), [#allocation3], %s785_s5 }
  0x29   : > { %s789_s14 = scalar_lea.vmem (!%p733_p8), [#allocation2], %s429_s6 }
  0x2c   : > { %641 = dma.done.wait (%p720_p4), %s151_s7, 1024  }
  0x2d   : > { %643 = vsyncadd (%p720_p4), %s151_s7, 4294966272 }
  0x2e   : > { %645 = dma.done.wait (%p40_p1), [#allocation6], 4096  }
  0x2f   : > { %647 = vsyncadd (%p40_p1), [#allocation6], 4294963200  ;;  %v221_v0 = vld [vmem:[#allocation5 + $0xf0] sm:$0xff]  ;;  %v222_v1 = vld [vmem:[#allocation5 + $0xf8] sm:$0xff]  ;;  %s431_s15 = sshll.u32 %s785_s5, 7  ;;  %s440_s8 = sshll.u32 %s711_s13, 7 }
  0x30   : > { %v219_v2 = vld [vmem:[#allocation5 + $0xe0] sm:$0xff]  ;;  %441 = vmatpush.msra.mxu2 %v221_v0  ;;  %457 = vmatpush.msra.mxu3 %v222_v1  ;;  %v220_v3 = vld [vmem:[#allocation5 + $0xe8] sm:$0xff]  ;;  %v217_v4 = vld [vmem:[#allocation5 + $0xd0] sm:$0xff]  ;;  %s808_s20 = scalar_lea.vmem [#allocation7], %s431_s15  ;;  %s334_s19 = scalar_lea.hbm %s862_s2, %s440_s8 }
  0x31   : > { %v218_v5 = vld [vmem:[#allocation5 + $0xd8] sm:$0xff]  ;;  %223 = vmatpush.msra.mxu0 %v221_v0  ;;  %264 = vmatpush.msra.mxu1 %v222_v1  ;;  %v215_v6 = vld [vmem:[#allocation5 + $0xc0] sm:$0xff]  ;;  %v216_v7 = vld [vmem:[#allocation5 + $0xc8] sm:$0xff]  ;;  %s335_s21 = sshll.u32 %s808_s20, 4  ;;  %s337_s22 = sshll.u32 %s334_s19, 4  ;;  %s336_s21 = int_to_ptr.vmem [resolvable:$true] %s335_s21  ;;  %s338_s22 = int_to_ptr.hbm [resolvable:$true] %s337_s22 }
  0x32   : > { %442 = vmatpush.msra.mxu2 %v219_v2  ;;  %458 = vmatpush.msra.mxu3 %v220_v3  ;;  %v213_v8 = vld [vmem:[#allocation5 + $0xb0] sm:$0xff]  ;;  %v214_v9 = vld [vmem:[#allocation5 + $0xb8] sm:$0xff]  ;;  %v211_v10 = vld [vmem:[#allocation5 + $0xa0] sm:$0xff]  ;;  %s322_s13 = scalar_lea.sflag [#allocation4], %s785_s5  ;;  %s610_s24 = sshra.s32 %s338_s22, 4  ;;  %s611_s24 = int_to_ptr.hbm [resolvable:$true] %s610_s24 }
  0x33   : > { %224 = vmatpush.msra.mxu0 %v219_v2  ;;  %265 = vmatpush.msra.mxu1 %v220_v3  ;;  %v212_v11 = vld [vmem:[#allocation5 + $0xa8] sm:$0xff]  ;;  %v209_v12 = vld [vmem:[#allocation5 + $0x90] sm:$0xff]  ;;  %v210_v13 = vld [vmem:[#allocation5 + $0x98] sm:$0xff]  ;;  %s612_s25 = scalar_lea.hbm %s611_s24, 128  ;;  %s616_s3 = scalar_lea.hbm %s862_s2, 256 }
  0x34   : > { %443 = vmatpush.msra.mxu2 %v217_v4  ;;  %459 = vmatpush.msra.mxu3 %v218_v5  ;;  %v207_v14 = vld [vmem:[#allocation5 + $0x80] sm:$0xff]  ;;  %v208_v15 = vld [vmem:[#allocation5 + $0x88] sm:$0xff]  ;;  %v205_v16 = vld [vmem:[#allocation5 + $0x70] sm:$0xff]  ;;  %p613_p1 = scmp.ne.s32.totalorder %s611_s24, %s612_s25  ;;  %p617_p11 = scmp.lt.s32.totalorder %s611_s24, %s862_s2 }
  0x35   : > { %225 = vmatpush.msra.mxu0 %v217_v4  ;;  %266 = vmatpush.msra.mxu1 %v218_v5  ;;  %v206_v17 = vld [vmem:[#allocation5 + $0x78] sm:$0xff]  ;;  %v203_v18 = vld [vmem:[#allocation5 + $0x60] sm:$0xff]  ;;  %v204_v19 = vld [vmem:[#allocation5 + $0x68] sm:$0xff]  ;;  %p618_p9 = scmp.lt.s32.totalorder %s616_s3, %s612_s25 }
  0x36   : > { %444 = vmatpush.msra.mxu2 %v215_v6  ;;  %460 = vmatpush.msra.mxu3 %v216_v7  ;;  %v201_v20 = vld [vmem:[#allocation5 + $0x50] sm:$0xff]  ;;  %v202_v21 = vld [vmem:[#allocation5 + $0x58] sm:$0xff]  ;;  %v199_v22 = vld [vmem:[#allocation5 + $0x40] sm:$0xff]  ;;  %p614_p4 = pnand %p613_p1, %p757_p7 }
  0x37   : > { %226 = vmatpush.msra.mxu0 %v215_v6  ;;  %267 = vmatpush.msra.mxu1 %v216_v7  ;;  %v200_v23 = vld [vmem:[#allocation5 + $0x48] sm:$0xff]  ;;  %v197_v24 = vld [vmem:[#allocation5 + $0x30] sm:$0xff]  ;;  %v198_v25 = vld [vmem:[#allocation5 + $0x38] sm:$0xff]  ;;  %p619_p2 = por %p618_p9, %p617_p11 }
  0x38   : > { %445 = vmatpush.msra.mxu2 %v213_v8  ;;  %461 = vmatpush.msra.mxu3 %v214_v9  ;;  %v195_v26 = vld [vmem:[#allocation5 + $0x20] sm:$0xff]  ;;  %v196_v27 = vld [vmem:[#allocation5 + $0x28] sm:$0xff]  ;;  %v193_v28 = vld [vmem:[#allocation5 + $0x10] sm:$0xff]  ;;  %p615_p8 = pneg %p614_p4 }
  0x39   : > { %227 = vmatpush.msra.mxu0 %v213_v8  ;;  %268 = vmatpush.msra.mxu1 %v214_v9  ;;  %v194_v29 = vld [vmem:[#allocation5 + $0x18] sm:$0xff]  ;;  %v191_v30 = vld [vmem:[#allocation5] sm:$0xff]  ;;  %v192_v31 = vld [vmem:[#allocation5 + $0x8] sm:$0xff] }
  0x3a   : > { %446 = vmatpush.msra.mxu2 %v211_v10  ;;  %462 = vmatpush.msra.mxu3 %v212_v11  ;;  %v187_v32 = vld [vmem:[%s789_s14 + $0x20] sm:$0xff]  ;;  %v188_v34 = vld [vmem:[%s789_s14 + $0x28] sm:$0xff]  ;;  %v189_v36 = vld [vmem:[%s789_s14 + $0x30] sm:$0xff]  ;;  %p620_p10 = pnand %p619_p2, %p615_p8 }
  0x3b   : > { %228 = vmatpush.msra.mxu0 %v211_v10  ;;  %269 = vmatpush.msra.mxu1 %v212_v11  ;;  %v183_v33 = vld [vmem:[%s789_s14] sm:$0xff]  ;;  %v184_v35 = vld [vmem:[%s789_s14 + $0x8] sm:$0xff]  ;;  %v185_v37 = vld [vmem:[%s789_s14 + $0x10] sm:$0xff] }
  0x3c   : > { %447 = vmatpush.msra.mxu2 %v209_v12  ;;  %463 = vmatpush.msra.mxu3 %v210_v13  ;;  %v190_v38 = vld [vmem:[%s789_s14 + $0x38] sm:$0xff] }
  0x3d   : > { %229 = vmatpush.msra.mxu0 %v209_v12  ;;  %270 = vmatpush.msra.mxu1 %v210_v13  ;;  %v186_v39 = vld [vmem:[%s789_s14 + $0x18] sm:$0xff] }
  0x3e   : > { %448 = vmatpush.msra.mxu2 %v207_v14  ;;  %464 = vmatpush.msra.mxu3 %v208_v15 }
  0x3f   : > { %230 = vmatpush.msra.mxu0 %v207_v14  ;;  %271 = vmatpush.msra.mxu1 %v208_v15 }
  0x40   : > { %449 = vmatpush.msra.mxu2 %v205_v16  ;;  %465 = vmatpush.msra.mxu3 %v206_v17 }
  0x41   : > { %231 = vmatpush.msra.mxu0 %v205_v16  ;;  %272 = vmatpush.msra.mxu1 %v206_v17 }
  0x42   : > { %450 = vmatpush.msra.mxu2 %v203_v18  ;;  %466 = vmatpush.msra.mxu3 %v204_v19 }
  0x43   : > { %232 = vmatpush.msra.mxu0 %v203_v18  ;;  %273 = vmatpush.msra.mxu1 %v204_v19 }
  0x44   : > { %451 = vmatpush.msra.mxu2 %v201_v20  ;;  %467 = vmatpush.msra.mxu3 %v202_v21 }
  0x45   : > { %233 = vmatpush.msra.mxu0 %v201_v20  ;;  %274 = vmatpush.msra.mxu1 %v202_v21 }
  0x46   : > { %452 = vmatpush.msra.mxu2 %v199_v22  ;;  %468 = vmatpush.msra.mxu3 %v200_v23 }
  0x47   : > { %234 = vmatpush.msra.mxu0 %v199_v22  ;;  %275 = vmatpush.msra.mxu1 %v200_v23 }
  0x48   : > { %453 = vmatpush.msra.mxu2 %v197_v24  ;;  %469 = vmatpush.msra.mxu3 %v198_v25 }
  0x49   : > { %235 = vmatpush.msra.mxu0 %v197_v24  ;;  %276 = vmatpush.msra.mxu1 %v198_v25 }
  0x4a   : > { %454 = vmatpush.msra.mxu2 %v195_v26  ;;  %470 = vmatpush.msra.mxu3 %v196_v27 }
  0x4b   : > { %236 = vmatpush.msra.mxu0 %v195_v26  ;;  %277 = vmatpush.msra.mxu1 %v196_v27 }
  0x4c   : > { %455 = vmatpush.msra.mxu2 %v193_v28  ;;  %471 = vmatpush.msra.mxu3 %v194_v29 }
  0x4d   : > { %237 = vmatpush.msra.mxu0 %v193_v28  ;;  %278 = vmatpush.msra.mxu1 %v194_v29 }
  0x4e   : > { %456 = vmatpush.msra.mxu2 %v191_v30  ;;  %472 = vmatpush.msra.mxu3 %v192_v31 }
  0x4f   : > { %251 = vmatmul.f32.vlgmr.msra.gmra.mxu2 %v187_v32  ;;  %292 = vmatmul.f32.vlgmr.msra.gmra.mxu3 %v187_v32 }
  0x50   : > { %238 = vmatpush.msra.mxu0 %v191_v30  ;;  %279 = vmatpush.msra.mxu1 %v192_v31 }
  0x51   : > { %239 = vmatmul.f32.vlgmr.msra.gmra.mxu0 %v183_v33  ;;  %280 = vmatmul.f32.vlgmr.msra.gmra.mxu1 %v183_v33 }
  0x57   : > { %254 = vmatmul.f32.gmra.mxu2 %v188_v34  ;;  %295 = vmatmul.f32.gmra.mxu3 %v188_v34 }
  0x59   : > { %242 = vmatmul.f32.gmra.mxu0 %v184_v35  ;;  %283 = vmatmul.f32.gmra.mxu1 %v184_v35 }
  0x5f   : > { %257 = vmatmul.f32.gmra.mxu2 %v189_v36  ;;  %298 = vmatmul.f32.gmra.mxu3 %v189_v36 }
  0x61   : > { %245 = vmatmul.f32.gmra.mxu0 %v185_v37  ;;  %286 = vmatmul.f32.gmra.mxu1 %v185_v37 }
  0x67   : > { %260 = vmatmul.f32.gmra.mxu2 %v190_v38  ;;  %301 = vmatmul.f32.gmra.mxu3 %v190_v38 }
  0x69   : > { %248 = vmatmul.f32.gmra.mxu0 %v186_v39  ;;  %289 = vmatmul.f32.gmra.mxu1 %v186_v39 }
  0xce   : > { %v240_v40 = vpop.f32.mrf.mxu0  ;;  %v281_v41 = vpop.f32.mrf.mxu1 }
  0xcf   : > { %305 = vst [vmem:[%s808_s20] sm:$0xff] %v240_v40 }
  0xd0   : > { %306 = vst [vmem:[%s808_s20 + $0x8] sm:$0xff] %v281_v41 }
  0xd2   : > { %v252_v42 = vpop.f32.mrf.mxu2  ;;  %v293_v43 = vpop.f32.mrf.mxu3 }
  0xd3   : > { %313 = vst [vmem:[%s808_s20 + $0x40] sm:$0xff] %v252_v42 }
  0xd4   : > { %314 = vst [vmem:[%s808_s20 + $0x48] sm:$0xff] %v293_v43 }
  0xd6   : > { %v243_v44 = vpop.f32.mrf.mxu0  ;;  %v284_v45 = vpop.f32.mrf.mxu1 }
  0xd7   : > { %307 = vst [vmem:[%s808_s20 + $0x10] sm:$0xff] %v243_v44 }
  0xd8   : > { %308 = vst [vmem:[%s808_s20 + $0x18] sm:$0xff] %v284_v45 }
  0xda   : > { %v255_v46 = vpop.f32.mrf.mxu2  ;;  %v296_v47 = vpop.f32.mrf.mxu3 }
  0xdb   : > { %315 = vst [vmem:[%s808_s20 + $0x50] sm:$0xff] %v255_v46 }
  0xdc   : > { %316 = vst [vmem:[%s808_s20 + $0x58] sm:$0xff] %v296_v47 }
  0xde   : > { %v246_v48 = vpop.f32.mrf.mxu0  ;;  %v287_v49 = vpop.f32.mrf.mxu1 }
  0xdf   : > { %309 = vst [vmem:[%s808_s20 + $0x20] sm:$0xff] %v246_v48 }
  0xe0   : > { %310 = vst [vmem:[%s808_s20 + $0x28] sm:$0xff] %v287_v49 }
  0xe2   : > { %v258_v50 = vpop.f32.mrf.mxu2  ;;  %v299_v51 = vpop.f32.mrf.mxu3 }
  0xe3   : > { %317 = vst [vmem:[%s808_s20 + $0x60] sm:$0xff] %v258_v50 }
  0xe4   : > { %318 = vst [vmem:[%s808_s20 + $0x68] sm:$0xff] %v299_v51 }
  0xe6   : > { %v249_v52 = vpop.f32.mrf.mxu0  ;;  %v290_v53 = vpop.f32.mrf.mxu1 }
  0xe7   : > { %311 = vst [vmem:[%s808_s20 + $0x30] sm:$0xff] %v249_v52 }
  0xe8   : > { %312 = vst [vmem:[%s808_s20 + $0x38] sm:$0xff] %v290_v53 }
  0xea   : > { %v261_v54 = vpop.f32.mrf.mxu2  ;;  %v302_v55 = vpop.f32.mrf.mxu3 }
  0xeb   : > { %319 = vst [vmem:[%s808_s20 + $0x70] sm:$0xff] %v261_v54 }
  0xec   : > { %320 = vst [vmem:[%s808_s20 + $0x78] sm:$0xff] %v302_v55 }
  0xed   : > { %623 = shalt.err (!%p620_p10)
}
  0xee   : > { %s673_s5 = smov 256   ;;  %s674_s6 = smov 16  }
  0xef   : > { %479 = dma.vmem_to_hbm [thread:$0]  (%p757_p7), %s336_s21, 2048, %s338_s22, %s322_s13, %s673_s5, %s673_s5, %s674_s6  }
  0xf0 PF: > { %s352_s7 = sand.u32 1, %s654_s9   ;;  %p868_p12 = scmp.ge.s32.totalorder %s666_s12, 2 }
  0xf1   : > { %s353_s14 = scalar_lea.sflag [#allocation4], %s352_s7 }
  0xf2   : > { %p490_p13 = pnand %p868_p12, %p725_p6 }
  0xf4   : > { %p491_p0 = pneg %p490_p13 }
  0xf6   : > { %649 = dma.done.wait (%p491_p0), %s353_s14, 2048  }
  0xf7   : > { %651 = vsyncadd (%p491_p0), %s353_s14, 4294965248  ;;  %p16_p3 = scmp.ge.s32.totalorder %s743_s23, 4   ;;  %s869_s9 = smov %s658_s10 }
  0xf8   : > { %s870_s10 = smov %s662_s11  ;;  %s871_s11 = smov %s753_s28 }
  0xf9   : > { %s872_s12 = smov %s743_s23  ;;  %18 = sbr.rel (!%p16_p3) target bundleno = 6 (0x6), region = 77 }
  0xfe   :  { %359 = vsyncpa [#allocation3], 1 }
  0xff   :  { %361 = vsyncpa [#allocation3 + $0x1], 1 }
 0x100   :  { %362 = vsyncpa [#allocation6], 1 }
 0x101   :  { %363 = vsyncpa [#allocation4], 1 }
 0x102   :  { %365 = vsyncpa [#allocation4 + $0x1], 1 }

</bundles_post_ra>
